<compile_context>
chip_gen: v7x
topology: tpu7x:2x2x1
jax: 0.10.0
libtpu: 0.0.40
codegen_flags: <defaults>
</compile_context>

<pallas_src>
import functools
import math

import jax
import jax.numpy as jnp
from jax import lax
from jax.experimental import pallas as pl
from jax.experimental.pallas import tpu as pltpu


def _label_smoothing_kernel(tgt_ref, x_ref, out_ref, *, padding_idx, base,
                            confidence, neg_entropy):
    """One grid step: (TILE_ROWS, V) logits -> packed (sum, count) partials."""
    x = x_ref[...]                                   # (TR, V), input dtype
    tr, v = x.shape
    tgt = tgt_ref[...]                               # (TR, 1) int32

    ignore = tgt == padding_idx                      # (TR, 1) bool
    valid = jnp.logical_not(ignore)
    tgt_c = jnp.where(ignore, 0, tgt)                # masked_fill(ignore, 0)

    # logsumexp over the vocab axis. max is exact in the input dtype; promote
    # to f32 only at the exp argument (no standalone full-tile upcast pass).
    m = jnp.max(x, axis=1, keepdims=True)            # (TR, 1)
    ex = jnp.exp((x - m).astype(jnp.float32))        # (TR, V) f32
    lse = m.astype(jnp.float32) + jnp.log(jnp.sum(ex, axis=1, keepdims=True))

    # Collapsed KL row sum (uses sum_v y_v == 1):
    #   sum_v y_v*(log y_v - logp_v) = C - (sum_v y_v * x_v - lse)
    # with y_v = confidence at the target index, base elsewhere.
    col = lax.broadcasted_iota(jnp.int32, (tr, v), 1)
    w = jnp.where(col == tgt_c, jnp.float32(confidence), jnp.float32(base))
    wx = jnp.sum(w * x.astype(jnp.float32), axis=1, keepdims=True)   # (TR, 1)

    row_kl = jnp.float32(neg_entropy) - (wx - lse)   # (TR, 1)
    # Zero padded / ignored rows.  Garbage rows of a partial last x block have
    # target == padding_idx (padded target), so they are masked here too (any
    # inf/nan they produced stays confined to their own row and is selected
    # away, never multiplied).
    row_kl = jnp.where(valid, row_kl, 0.0)

    s = jnp.sum(row_kl)                              # scalar f32
    c = jnp.sum(valid.astype(jnp.float32))           # scalar f32 (non-pad count)

    # Pack sum (lane 0) and count (lane 1) into one lane-dense (8, 128) block.
    lane = lax.broadcasted_iota(jnp.int32, (8, 128), 1)
    packed = jnp.where(lane == 0, s, jnp.where(lane == 1, c, jnp.float32(0.0)))
    out_ref[...] = packed[None]


def _pick_tile_rows(n, v, itemsize, vmem_cap):
    """Choose tile_rows from a byte budget (generation-aware)."""
    rows8 = ((n + 7) // 8) * 8
    # Budget ~55% of VMEM for: 2x double-buffered input block + ~4 full-tile
    # f32/i32 temporaries (exp temp, iota, weight/select, promoted x).
    budget = int(vmem_cap * 0.55)
    per_row = v * (2 * itemsize + 4 * 4)
    tile_rows = max(8, (budget // max(per_row, 1)) // 8 * 8)
    tile_rows = min(tile_rows, rows8)
    # Small-VMEM chips (v7x) have 2 TensorCores: keep >= 2 grid steps so the
    # "parallel" grid axis can use both.  No-op when only one 8-row tile exists.
    if vmem_cap <= (96 << 20) and rows8 > 8:
        half = ((rows8 // 2 + 7) // 8) * 8
        tile_rows = min(tile_rows, max(8, half))
    return tile_rows


def label_smoothing_loss(x, target, *, size, padding_idx, smoothing,
                         normalize_length=False, tile_rows=None):
    """x: (N, size) float logits (f32 or bf16); target: (N,) int labels."""
    n, v = x.shape
    assert v == size and size > 1

    confidence = 1.0 - smoothing
    base = smoothing / (size - 1)
    # C = sum_v y*log(y), with 0*log(0) := 0 (computed once in Python).
    neg_entropy = 0.0
    if confidence > 0.0:
        neg_entropy += confidence * math.log(confidence)
    if base > 0.0:
        neg_entropy += (size - 1) * base * math.log(base)

    itemsize = jnp.dtype(x.dtype).itemsize
    try:
        vmem_cap = int(pltpu.get_tpu_info().vmem_capacity_bytes)
    except Exception:
        vmem_cap = 64 << 20        # conservative (v7x-sized) fallback

    if tile_rows is None:
        tile_rows = _pick_tile_rows(n, v, itemsize, vmem_cap)
    tile_rows = max(8, (int(tile_rows) // 8) * 8)
    rows8 = ((n + 7) // 8) * 8
    tile_rows = min(tile_rows, rows8)

    num_tiles = -(-n // tile_rows)                   # cdiv
    n_pad = num_tiles * tile_rows

    # Only the tiny target vector is padded (NOT the (N, V) logits).  Padded
    # targets are padding_idx, so the corresponding garbage rows of the last
    # (partial) logits block contribute 0 to both the KL sum and the count.
    if n_pad != n:
        target = jnp.pad(target, (0, n_pad - n), constant_values=padding_idx)
    tgt2d = target.astype(jnp.int32).reshape(n_pad, 1)

    # VMEM budget: double-buffered x block + ~4 full-tile f32/i32 temporaries.
    blk_bytes = tile_rows * v * itemsize
    temps_bytes = 4 * tile_rows * v * 4
    est_vmem = 2 * blk_bytes + temps_bytes + (2 << 20)
    vmem_limit = int(min(max(est_vmem, 32 << 20), (vmem_cap * 85) // 100))

    kernel = functools.partial(
        _label_smoothing_kernel,
        padding_idx=padding_idx, base=base, confidence=confidence,
        neg_entropy=neg_entropy)

    out = pl.pallas_call(
        kernel,
        out_shape=jax.ShapeDtypeStruct((num_tiles, 8, 128), jnp.float32),
        grid_spec=pltpu.PrefetchScalarGridSpec(
            num_scalar_prefetch=0,
            grid=(num_tiles,),
            in_specs=[
                pl.BlockSpec((tile_rows, 1), lambda i: (i, 0)),
                pl.BlockSpec((tile_rows, v), lambda i: (i, 0)),
            ],
            out_specs=pl.BlockSpec((1, 8, 128), lambda i: (i, 0, 0)),
        ),
        compiler_params=pltpu.CompilerParams(
            dimension_semantics=("parallel",),
            vmem_limit_bytes=vmem_limit),
    )(tgt2d, x)

    total = jnp.sum(out[:, 0, 0])
    if normalize_length:
        denom = jnp.sum(out[:, 0, 1])                # #non-pad tokens
    else:
        denom = jnp.float32(n)                       # original batch size
    return total / denom


def _reference(x, target, *, size, padding_idx, smoothing, normalize_length):
    x = x.astype(jnp.float32)
    n = x.shape[0]
    confidence = 1.0 - smoothing
    ignore = target == padding_idx
    total = n - jnp.sum(ignore)
    tgt = jnp.where(ignore, 0, target)
    true_dist = jnp.full_like(x, smoothing / (size - 1))
    true_dist = true_dist.at[jnp.arange(n), tgt].set(confidence)
    logp = jax.nn.log_softmax(x, axis=1)
    kl = jnp.where(true_dist > 0, true_dist * jnp.log(true_dist), 0.0) \
        - true_dist * logp
    kl = jnp.where(ignore[:, None], 0.0, kl)
    denom = total if normalize_length else n
    return jnp.sum(kl) / denom


if __name__ == "__main__":
    V = 128
    PAD = 0
    SMOOTHING = 0.1

    key = jax.random.PRNGKey(0)
    k1, k2, k3, k4 = jax.random.split(key, 4)

    # Case 1: N divisible by 8, normalize_length=False.
    N1 = 16
    x1 = jax.random.normal(k1, (N1, V), dtype=jnp.float32)
    t1 = jax.random.randint(k2, (N1,), 0, V, dtype=jnp.int32)
    t1 = t1.at[3].set(PAD).at[7].set(PAD)
    loss1 = jax.block_until_ready(label_smoothing_loss(
        x1, t1, size=V, padding_idx=PAD, smoothing=SMOOTHING,
        normalize_length=False))
    ref1 = _reference(x1, t1, size=V, padding_idx=PAD, smoothing=SMOOTHING,
                      normalize_length=False)
    assert jnp.allclose(loss1, ref1, atol=1e-4, rtol=1e-4), (loss1, ref1)

    # Case 2: ragged N (partial last block, unpadded logits) with
    # normalize_length=True.
    N2 = 13
    x2 = jax.random.normal(k3, (N2, V), dtype=jnp.float32)
    t2 = jax.random.randint(k4, (N2,), 0, V, dtype=jnp.int32)
    t2 = t2.at[2].set(PAD)
    loss2 = jax.block_until_ready(label_smoothing_loss(
        x2, t2, size=V, padding_idx=PAD, smoothing=SMOOTHING,
        normalize_length=True))
    ref2 = _reference(x2, t2, size=V, padding_idx=PAD, smoothing=SMOOTHING,
                      normalize_length=True)
    assert jnp.allclose(loss2, ref2, atol=1e-4, rtol=1e-4), (loss2, ref2)

    # Case 3: explicit small tile to force multiple grid steps + partial block.
    loss3 = jax.block_until_ready(label_smoothing_loss(
        x2, t2, size=V, padding_idx=PAD, smoothing=SMOOTHING,
        normalize_length=False, tile_rows=8))
    ref3 = _reference(x2, t2, size=V, padding_idx=PAD, smoothing=SMOOTHING,
                      normalize_length=False)
    assert jnp.allclose(loss3, ref3, atol=1e-4, rtol=1e-4), (loss3, ref3)

    print("KERNEL_OK")
</pallas_src>

<mosaic_0001>
module attributes {stable_mosaic.version = 11 : i64} {
  func.func @_label_smoothing_kernel(%arg0: i32, %arg1: memref<8x1xi32, #tpu.memory_space<vmem>>, %arg2: memref<8x128xf32, #tpu.memory_space<vmem>>, %arg3: memref<1x8x128xf32, #tpu.memory_space<vmem>>) attributes {dimension_semantics = [#tpu.dimension_semantics<parallel>], iteration_bounds = array<i64: 2>, scalar_prefetch = 0 : i64, scratch_operands = 0 : i64, tpu.core_type = #tpu.core_type<tc>, window_params = [{transform_indices = @transform_0, window_bounds = array<i64: 8, 1>}, {transform_indices = @transform_1, window_bounds = array<i64: 8, 128>}, {transform_indices = @transform_2, window_bounds = array<i64: 1, 8, 128>}]} {
    %c0 = arith.constant 0 : index
    %c0_0 = arith.constant 0 : index
    %0 = vector.load %arg2[%c0, %c0_0] : memref<8x128xf32, #tpu.memory_space<vmem>>, vector<8x128xf32>
    %c0_1 = arith.constant 0 : index
    %c0_2 = arith.constant 0 : index
    %1 = vector.load %arg1[%c0_1, %c0_2] : memref<8x1xi32, #tpu.memory_space<vmem>>, vector<8x1xi32>
    %c0_i32 = arith.constant 0 : i32
    %2 = vector.broadcast %c0_i32 : i32 to vector<8x1xi32>
    %3 = arith.cmpi eq, %1, %2 : vector<8x1xi32>
    %cst = arith.constant dense<true> : vector<8x1xi1>
    %4 = arith.xori %3, %cst : vector<8x1xi1>
    %c0_i32_3 = arith.constant 0 : i32
    %5 = vector.broadcast %c0_i32_3 : i32 to vector<8x1xi32>
    %6 = arith.select %3, %5, %1 : vector<8x1xi1>, vector<8x1xi32>
    %cst_4 = arith.constant dense<0xFF800000> : vector<8xf32>
    %7 = vector.multi_reduction <maximumf>, %0, %cst_4 [1] : vector<8x128xf32> to vector<8xf32>
    %8 = vector.shape_cast %7 : vector<8xf32> to vector<8x1xf32>
    %9 = vector.broadcast %8 : vector<8x1xf32> to vector<8x128xf32>
    %10 = arith.subf %0, %9 : vector<8x128xf32>
    %11 = math.exp %10 : vector<8x128xf32>
    %cst_5 = arith.constant dense<0.000000e+00> : vector<8xf32>
    %12 = vector.multi_reduction <add>, %11, %cst_5 [1] : vector<8x128xf32> to vector<8xf32>
    %13 = vector.shape_cast %12 : vector<8xf32> to vector<8x1xf32>
    %14 = math.log %13 : vector<8x1xf32>
    %15 = arith.addf %8, %14 : vector<8x1xf32>
    %16 = tpu.iota {dimensions = array<i32: 1>} : vector<8x128xi32>
    %17 = vector.broadcast %6 : vector<8x1xi32> to vector<8x128xi32>
    %18 = arith.cmpi eq, %16, %17 : vector<8x128xi32>
    %cst_6 = arith.constant 0.899999976 : f32
    %cst_7 = arith.constant 7.87401571E-4 : f32
    %19 = vector.broadcast %cst_6 : f32 to vector<8x128xf32>
    %20 = vector.broadcast %cst_7 : f32 to vector<8x128xf32>
    %21 = arith.select %18, %19, %20 : vector<8x128xi1>, vector<8x128xf32>
    %22 = arith.mulf %21, %0 : vector<8x128xf32>
    %cst_8 = arith.constant dense<0.000000e+00> : vector<8xf32>
    %23 = vector.multi_reduction <add>, %22, %cst_8 [1] : vector<8x128xf32> to vector<8xf32>
    %24 = vector.shape_cast %23 : vector<8xf32> to vector<8x1xf32>
    %25 = arith.subf %24, %15 : vector<8x1xf32>
    %cst_9 = arith.constant -0.809501707 : f32
    %26 = vector.broadcast %cst_9 : f32 to vector<8x1xf32>
    %27 = arith.subf %26, %25 : vector<8x1xf32>
    %cst_10 = arith.constant 0.000000e+00 : f32
    %28 = vector.broadcast %cst_10 : f32 to vector<8x1xf32>
    %29 = arith.select %4, %27, %28 : vector<8x1xi1>, vector<8x1xf32>
    %30 = vector.shape_cast %29 : vector<8x1xf32> to vector<1x8x1xf32>
    %cst_11 = arith.constant dense<0.000000e+00> : vector<1xf32>
    %31 = vector.multi_reduction <add>, %30, %cst_11 [1, 2] : vector<1x8x1xf32> to vector<1xf32>
    %32 = vector.shape_cast %31 : vector<1xf32> to vector<1x1x1xf32>
    %33 = vector.extract %32[0, 0, 0] : f32 from vector<1x1x1xf32>
    %34 = arith.extui %4 : vector<8x1xi1> to vector<8x1xi32>
    %35 = arith.sitofp %34 : vector<8x1xi32> to vector<8x1xf32>
    %36 = vector.shape_cast %35 : vector<8x1xf32> to vector<1x8x1xf32>
    %cst_12 = arith.constant dense<0.000000e+00> : vector<1xf32>
    %37 = vector.multi_reduction <add>, %36, %cst_12 [1, 2] : vector<1x8x1xf32> to vector<1xf32>
    %38 = vector.shape_cast %37 : vector<1xf32> to vector<1x1x1xf32>
    %39 = vector.extract %38[0, 0, 0] : f32 from vector<1x1x1xf32>
    %40 = tpu.iota {dimensions = array<i32: 1>} : vector<8x128xi32>
    %c0_i32_13 = arith.constant 0 : i32
    %41 = vector.broadcast %c0_i32_13 : i32 to vector<8x128xi32>
    %42 = arith.cmpi eq, %40, %41 : vector<8x128xi32>
    %c1_i32 = arith.constant 1 : i32
    %43 = vector.broadcast %c1_i32 : i32 to vector<8x128xi32>
    %44 = arith.cmpi eq, %40, %43 : vector<8x128xi32>
    %cst_14 = arith.constant 0.000000e+00 : f32
    %45 = vector.broadcast %39 : f32 to vector<8x128xf32>
    %46 = vector.broadcast %cst_14 : f32 to vector<8x128xf32>
    %47 = arith.select %44, %45, %46 : vector<8x128xi1>, vector<8x128xf32>
    %48 = vector.broadcast %33 : f32 to vector<8x128xf32>
    %49 = arith.select %42, %48, %47 : vector<8x128xi1>, vector<8x128xf32>
    %50 = vector.shape_cast %49 : vector<8x128xf32> to vector<1x8x128xf32>
    %c0_15 = arith.constant 0 : index
    %c0_16 = arith.constant 0 : index
    %c0_17 = arith.constant 0 : index
    %51 = vector.load %arg3[%c0_15, %c0_16, %c0_17] : memref<1x8x128xf32, #tpu.memory_space<vmem>>, vector<1x8x128xf32>
    tpu.vector_store %arg3[%c0_15, %c0_16, %c0_17], %50 {strides = array<i32>} : memref<1x8x128xf32, #tpu.memory_space<vmem>>, vector<1x8x128xf32>,
    return
  }
  func.func @transform_0(%arg0: i32) -> (i32, i32) {
    %c0_i32 = arith.constant 0 : i32
    %c0_i32_0 = arith.constant 0 : i32
    return %arg0, %c0_i32 : i32, i32
  }
  func.func @transform_1(%arg0: i32) -> (i32, i32) {
    %c0_i32 = arith.constant 0 : i32
    %c0_i32_0 = arith.constant 0 : i32
    return %arg0, %c0_i32 : i32, i32
  }
  func.func @transform_2(%arg0: i32) -> (i32, i32, i32) {
    %c0_i32 = arith.constant 0 : i32
    %c0_i32_0 = arith.constant 0 : i32
    %c0_i32_1 = arith.constant 0 : i32
    return %arg0, %c0_i32, %c0_i32_0 : i32, i32, i32
  }
}

</mosaic_0001>

<bundles_post_ra>
// kernel: tpu_custom_call.1
= control target key start
LH: loop header
LB: loop body
LE: loop exit
PB: predicated region body
PF: predicated region fallthrough
CT: control target
= control target key end

     0   :  { %7 = vsyncpa [#allocation3], 0  ;;  %s549_s0 = inlined_call_operand.vmem [shape: s32[16,1], index: 0, kind: input, shape index: {}]   ;;  %s550_s1 = inlined_call_operand.vmem [shape: f32[16,128], index: 1, kind: input, shape index: {}]   ;;  %s551_s2 = inlined_call_operand.hbm [shape: f32[2,8,128], index: 2, kind: output, shape index: {}]  }
   0x1   :  { %9 = vsyncpa [#allocation3 + $0x1], 0  ;;  %s446_s9 = smov 0   ;;  %s448_s10 = smov 0  }
   0x2   :  { %s450_s11 = smov 0   ;;  %s452_s12 = smov 0  }
   0x3 LB: > { %s467_s13 = sadd.s32 4294967295, %s424_s12   ;;  %s298_s14 = sadd.s32 4294967294, %s424_s12   ;;  %s424_s12 = sphi %s452_s12, %s557_s12   ;;  %s420_s11 = sphi %s450_s11, %s556_s11   ;;  %s416_s10 = sphi %s448_s10, %s555_s10   ;;  %s412_s9 = sphi %s446_s9, %s554_s9  }
   0x4   : > { %s471_s15 = sadd.s32 1, %s424_s12   ;;  %s74_s16 = sadd.s32 1, %s420_s11 }
   0x5   : > { %s71_s17 = ssub.s32 %s424_s12, %s471_s15  ;;  %p84_p0 = scmp.ne.s32.totalorder %s420_s11, %s416_s10 }
   0x6   : > { %p72_p1 = scmp.eq.s32.totalorder %s71_s17, 0  ;;  %p85_p2 = scmp.eq.s32.totalorder %s467_s13, 1 }
   0x7   : > { %p90_p3 = scmp.ne.s32.totalorder %s416_s10, %s412_s9  ;;  %p91_p4 = scmp.eq.s32.totalorder %s298_s14, 1 }
   0x8   : > { %s482_s18 = scalar_select %p72_p1, %s420_s11, %s74_s16  }
   0x9   : > { %p484_p5 = por %p85_p2, %p84_p0  ;;  %p488_p6 = por %p91_p4, %p90_p3 }
   0xa   : > { %p301_p7 = scmp.ge.s32.totalorder %s424_s12, 1  ;;  %p123_p8 = scmp.lt.s32.totalorder %s424_s12, 3 }
   0xc   : > { %p124_p9 = pnand %p301_p7, %p123_p8 }
   0xd   : > { %p148_p10 = scmp.lt.s32.totalorder (!%p124_p9), %s467_s13, 1  ;;  %v426_v0 = vmov (!%p124_p9), 0   ;;  %v170_v5 = vlaneseq (!%p124_p9)  ;;  %v427_v9 = vmov (!%p124_p9), 0.0007874016   ;;  %vm428_vm2 = vmmov (!%p124_p9), 1   ;;  %s145_s29 = sand.u32 (!%p124_p9), 1, %s416_s10  }
   0xe   : > { %127 = sbr.rel (%p124_p9) target bundleno = 571 (0x23b), region = 28  ;;  %357 = vset.pattern.permute.xlu0 (!%p124_p9), %v426_v0  ;;  %vm183_vm4 = vcmask (!%p124_p9), 7168   ;;  %v429_v21 = vmov (!%p124_p9), 0.0   ;;  %s302_s30 = sshll.u32 (!%p124_p9), %s145_s29, 3 }
   0xf   : > { %v171_v7 = vand.u32 (!%p124_p9), 127, %v170_v5  ;;  %s307_s3 = sshll.u32 (!%p124_p9), %s467_s13, 7  ;;  %s147_s5 = scalar_lea.vmem (!%p124_p9), [#allocation2], %s302_s30 }
  0x10   : > { %s227_s6 = sshll.u32 (!%p124_p9), %s147_s5, 4  ;;  %s507_s16 = scalar_lea.hbm (!%p124_p9), %s551_s2, %s307_s3  ;;  %s509_s6 = int_to_ptr.vmem [resolvable:$true] %s227_s6 }
  0x11   : > { %vm207_vm5 = vcmp.eq.s32.totalorder (!%p124_p9), %v171_v7, 1  ;;  %vm206_vm6 = vcmp.eq.s32.totalorder (!%p124_p9), %v171_v7, 0  ;;  %s362_s17 = scalar_lea.vmem (!%p124_p9), %s509_s6, 128 }
  0x12   : > { %p363_p11 = scmp.ne.s32.totalorder (!%p124_p9), %s509_s6, %s362_s17 }
  0x14   : > { %p364_p12 = pnand (!%p124_p9), %p363_p11, %p484_p5 }
  0x15   : > { %s149_s21 = scalar_select %p148_p10, %s467_s13, 1 }
  0x16   : > { %s214_s13 = scalar_lea.sflag [#allocation3], %s145_s29  ;;  %p365_p13 = pneg %p364_p12 }
  0x17   : > { %s303_s22 = sshll.u32 %s149_s21, 3  ;;  %s430_s21 = smov [#allocation2]  }
  0x18   : > { %s155_s25 = scalar_lea.vmem %s550_s1, %s303_s22  ;;  %s151_s28 = scalar_lea.vmem %s549_s0, %s303_s22 }
  0x19   : > { %v156_v1 = vld [vmem:[%s155_s25] sm:$0xff]  ;;  %s366_s22 = sshll.u32 %s430_s21, 4  ;;  %s367_s22 = int_to_ptr.vmem [resolvable:$false] %s366_s22 }
  0x1a   : > { %160 = vmax.xlane.f32.xlu0 %v156_v1  ;;  %v157_v2 = vld [vmem:[%s151_s28] sm:$0xff]  ;;  %s368_s23 = scalar_lea.vmem %s367_s22, 256  ;;  %p369_p0 = scmp.lt.s32.totalorder %s509_s6, %s367_s22 }
  0x1b   : > { %vm158_vm1 = vcmp.eq.s32.totalorder %v157_v2, 0  ;;  %p370_p1 = scmp.lt.s32.totalorder %s368_s23, %s362_s17 }
  0x1c   : > { %vm159_vm3 = vmxor %vm158_vm1, %vm428_vm2 }
  0x1d   : > { %v305_v22 = vsel %vm159_vm3, 1.0, %v429_v21  ;;  %p371_p2 = por %p370_p1, %p369_p0 }
  0x1e   : > { %v196_v24 = vsel %vm183_vm4, %v305_v22, 0.0 }
  0x1f   : > { %p372_p3 = pnand %p371_p2, %p365_p13 }
  0x30   : > { %173 = vperm.xlu0 %357, %v157_v2  }
  0xa7   : > { %v161_v3 = vpop.xlane.xlu0 %160 }
  0xa8   : > { %v162_v4 = vsub.f32 %v156_v1, %v161_v3 }
  0xaa   : > { %v163_v6 = vmul.f32 1.442695, %v162_v4 }
  0xac   : > { %358 = vpow2.f32 %v163_v6 }
  0xaf   : > { %v174_v8 = vpop.permute.xlu0 %173 }
  0xb0   : > { %vm175_vm0 = vcmp.eq.s32.totalorder %v171_v7, %v174_v8 }
  0xb1   : > { %v176_v10 = vsel %vm175_vm0, 0.9, %v427_v9 }
  0xb2   : > { %v177_v12 = vmul.f32 %v176_v10, %v156_v1 }
  0xb6   : > { %v359_v11 = vpop.eup %358 }
  0xb7   : > { %165 = vadd.xlane.f32.xlu1 %v359_v11 }
  0xbb   : > { %178 = vadd.xlane.f32.xlu1 %v177_v12 }
 0x144   : > { %v166_v13 = vpop.xlane.xlu1 %165 }
 0x145   : > { %360 = vlog2.f32 %v166_v13 }
 0x148   : > { %v179_v16 = vpop.xlane.xlu1 %178 }
 0x14f   : > { %v361_v14 = vpop.eup %360 }
 0x150   : > { %v168_v15 = vmul.f32 0.6931472, %v361_v14 }
 0x152   : > { %v169_v17 = vadd.f32 %v168_v15, %v161_v3 }
 0x154   : > { %v180_v18 = vsub.f32 %v179_v16, %v169_v17 }
 0x156   : > { %v181_v19 = vsub.f32 -0.8095017, %v180_v18 }
 0x158   : > { %v182_v20 = vsel %vm159_vm3, %v181_v19, 0.0 }
 0x159   : > { %v184_v23 = vsel %vm183_vm4, %v182_v20, 0.0 }
 0x15a   : > { %185 = vadd.xlane.f32.xlu1 %v184_v23 }
 0x15e   : > { %197 = vadd.xlane.f32.xlu1 %v196_v24 }
 0x1e7   : > { %v186_v25 = vpop.xlane.xlu1 %185 }
 0x1e8   : > { %v187_v26 = vrot.slane %v186_v25, 4 }
 0x1ea   : > { %v188_v27 = vadd.f32 %v187_v26, %v186_v25 }
 0x1eb   : > { %v198_v28 = vpop.xlane.xlu1 %197 }
 0x1ec   : > { %v189_v29 = vrot.slane %v188_v27, 2  ;;  %v199_v30 = vrot.slane %v198_v28, 4 }
 0x1ee   : > { %v200_v31 = vadd.f32 %v199_v30, %v198_v28  ;;  %v190_v32 = vadd.f32 %v189_v29, %v188_v27 }
 0x1f0   : > { %v201_v33 = vrot.slane %v200_v31, 2  ;;  %v191_v34 = vrot.slane %v190_v32, 1 }
 0x1f2   : > { %v202_v35 = vadd.f32 %v201_v33, %v200_v31  ;;  %v192_v36 = vadd.f32 %v191_v34, %v190_v32 }
 0x1f4   : > { %310 = vpush %v192_v36  ;;  %v203_v37 = vrot.slane %v202_v35, 1 }
 0x1f6   : > { %v204_v38 = vadd.f32 %v203_v37, %v202_v35 }
 0x1f8   : > { %312 = vpush %v204_v38 }
 0x225   : > { %s311_s4 = spop %310 }
 0x226   : > { %v210_v40 = vstv %s311_s4 }
 0x229   : > { %s313_s7 = spop %312 }
 0x22a   : > { %v208_v39 = vstv %s313_s7 }
 0x22b   : > { %v209_v41 = vsel %vm207_vm5, %v208_v39, 0.0 }
 0x22c   : > { %v211_v42 = vsel %vm206_vm6, %v210_v40, %v209_v41 }
 0x22d   : > { %212 = vst [vmem:[%s147_s5] sm:$0xff] %v211_v42 }
 0x22e   : > { %375 = shalt.err (!%p372_p3)
}
 0x22f   : > { %s376_s24 = scalar_lea.hbm %s507_s16, 128  ;;  %s380_s27 = scalar_lea.hbm %s551_s2, 256 }
 0x230   : > { %p377_p4 = scmp.ne.s32.totalorder %s507_s16, %s376_s24  ;;  %p381_p9 = scmp.lt.u32.totalorder %s507_s16, %s551_s2 }
 0x231   : > { %p382_p10 = scmp.lt.u32.totalorder %s380_s27, %s376_s24  ;;  %p384_p12 = scmp.lt.u32.totalorder %s376_s24, %s507_s16 }
 0x232   : > { %p378_p7 = pnand %p377_p4, %p484_p5 }
 0x233   : > { %p383_p11 = por %p382_p10, %p381_p9 }
 0x234   : > { %p379_p8 = pneg %p378_p7 }
 0x235   : > { %p385_p13 = por %p384_p12, %p383_p11 }
 0x237   : > { %p386_p0 = pnand %p385_p13, %p379_p8 }
 0x239   : > { %389 = shalt.err (!%p386_p0)
}
 0x23a   : > { %314 = dma.vmem_to_hbm [thread:$0]  (%p484_p5), %s509_s6, 128, %s507_s16, %s214_s13  }
 0x23b PF: > { %p320_p1 = scmp.ge.s32.totalorder %s424_s12, 2  ;;  %s239_s30 = sand.u32 1, %s412_s9  }
 0x23c   : > { %s240_s3 = scalar_lea.sflag [#allocation3], %s239_s30 }
 0x23d   : > { %p317_p2 = pnand %p320_p1, %p488_p6 }
 0x23f   : > { %407 = dma.done.wait (!%p317_p2), %s240_s3, 128  }
 0x240   : > { %409 = vsyncadd (!%p317_p2), %s240_s3, 4294967168  ;;  %p12_p3 = scmp.ge.s32.totalorder %s471_s15, 4   ;;  %s554_s9 = smov %s416_s10 }
 0x241   : > { %s555_s10 = smov %s420_s11  ;;  %s556_s11 = smov %s482_s18 }
 0x242   : > { %s557_s12 = smov %s471_s15  ;;  %14 = sbr.rel (!%p12_p3) target bundleno = 3 (0x3), region = 66 }
 0x249   :  { %245 = vsyncpa [#allocation3], 1 }
 0x24a   :  { %247 = vsyncpa [#allocation3 + $0x1], 1 }

</bundles_post_ra>
